<compile_context>
chip_gen: v6e
topology: v6e:2x2x1
jax: 0.10.0
libtpu: 0.0.40
codegen_flags: <defaults>
</compile_context>

<pallas_src>
from functools import partial, lru_cache

import numpy as np
import jax
import jax.numpy as jnp
from jax.experimental import pallas as pl
from jax.experimental.pallas import tpu as pltpu


# ----------------------------------------------------------------------------
# Host-side: PyTorch-style bilinear interpolation matrix (align_corners=False).
# Computed with numpy once per (in_size, out_size) and cached.
# ----------------------------------------------------------------------------
@lru_cache(maxsize=None)
def _interp_matrix_np(in_size: int, out_size: int) -> np.ndarray:
    """Row-stochastic [out_size, in_size] matrix reproducing
    F.interpolate(mode='bilinear', align_corners=False) along one axis."""
    i = np.arange(out_size, dtype=np.float32)
    src = (i + 0.5) * (np.float32(in_size) / np.float32(out_size)) - 0.5
    src = np.maximum(src, 0.0)                       # PyTorch clamps negatives to 0
    i0 = np.minimum(np.floor(src).astype(np.int64), in_size - 1)
    i1 = np.minimum(i0 + 1, in_size - 1)
    lam = (src - i0.astype(np.float32)).astype(np.float32)
    m = np.zeros((out_size, in_size), np.float32)
    rows = np.arange(out_size)
    np.add.at(m, (rows, i0), 1.0 - lam)
    np.add.at(m, (rows, i1), lam)                    # handles i0 == i1 edge case
    return m


# ----------------------------------------------------------------------------
# Block-size selection helpers (VMEM-budget aware, portable across v5e/v6e/v7x).
# ----------------------------------------------------------------------------
def _choose_nb(n: int, h: int, w: int, out_h: int, out_w: int,
               budget_bytes: int = 20 * 1024 * 1024, max_nb: int = 16) -> int:
    """Number of images folded into one resize block (double-buffered f32)."""
    per_img = (h * w + out_h * out_w) * 4 * 2
    cap = max(1, budget_bytes // per_img)
    cap = int(min(cap, max_nb, n))
    # keep the block's sublane extents (nb*h and nb*out_h) multiples of 8
    for nb in range(cap, 0, -1):
        if (nb * h) % 8 == 0 and (nb * out_h) % 8 == 0:
            return nb
    return n  # fall back: single block covering the full (possibly unaligned) dims


def _pick_row_tile(ct: int, h: int, w: int,
                   budget_bytes: int = 8 * 1024 * 1024) -> int:
    """Spatial row-tile for the mask reduction (double-buffered f32 input)."""
    per_row = ct * w * 4 * 2
    th = max(1, budget_bytes // per_row)
    if th >= h or h <= 8:
        return h
    return max(8, (th // 8) * 8)


# ----------------------------------------------------------------------------
# Pallas kernel 1: batched bilinear resize of Nb [H, W] images per grid step.
#   tmp[n]  = Wh @ x[n]          (Nb MXU matmuls into a VMEM scratch slab)
#   out     = tmp_slab @ WwT     (one large MXU matmul, one big store)
# ----------------------------------------------------------------------------
def _resize_kernel(wh_ref, wwt_ref, x_ref, o_ref, tmp_ref, *, nb, h, out_h):
    wh = wh_ref[...]                                          # [Ho, H] f32 (hoisted)
    for n in range(nb):                                       # static unroll
        xn = x_ref[pl.ds(n * h, h), :].astype(jnp.float32)    # [H, W]
        tmp_ref[pl.ds(n * out_h, out_h), :] = jnp.dot(
            wh, xn, preferred_element_type=jnp.float32)       # [Ho, W]
    # one big W-axis contraction + single lane-dense store of the output block
    o_ref[...] = jnp.dot(tmp_ref[...], wwt_ref[...],
                         preferred_element_type=jnp.float32).astype(o_ref.dtype)


def bilinear_resize_pallas(x_nhw: jnp.ndarray, out_h: int, out_w: int) -> jnp.ndarray:
    """x_nhw: [N, H, W] -> [N, out_h, out_w], bilinear, align_corners=False."""
    n, h, w = x_nhw.shape
    wh = jnp.asarray(_interp_matrix_np(h, out_h))             # [Ho, H]
    wwt = jnp.asarray(_interp_matrix_np(w, out_w).T)          # [W, Wo]

    nb = _choose_nb(n, h, w, out_h, out_w)
    n_pad = ((n + nb - 1) // nb) * nb
    if n_pad != n:
        x_nhw = jnp.pad(x_nhw, ((0, n_pad - n), (0, 0), (0, 0)))
    x2d = x_nhw.reshape(n_pad * h, w)                         # contiguous, free

    grid = (n_pad // nb,)
    kernel = partial(_resize_kernel, nb=nb, h=h, out_h=out_h)

    out2d = pl.pallas_call(
        kernel,
        out_shape=jax.ShapeDtypeStruct((n_pad * out_h, out_w), x_nhw.dtype),
        grid=grid,
        in_specs=[
            pl.BlockSpec((out_h, h), lambda i: (0, 0)),       # Wh  (resident)
            pl.BlockSpec((w, out_w), lambda i: (0, 0)),       # WwT (resident)
            pl.BlockSpec((nb * h, w), lambda i: (i, 0)),      # Nb-image input slab
        ],
        out_specs=pl.BlockSpec((nb * out_h, out_w), lambda i: (i, 0)),
        scratch_shapes=[pltpu.VMEM((nb * out_h, w), jnp.float32)],
        compiler_params=pltpu.CompilerParams(
            dimension_semantics=("parallel",),
            vmem_limit_bytes=48 * 1024 * 1024,
        ),
    )(wh, wwt, x2d)

    out = out2d.reshape(n_pad, out_h, out_w)
    if n_pad != n:
        out = out[:n]
    return out


# ----------------------------------------------------------------------------
# Pallas kernel 2: HSI-derived mask (mean over channel & band dims > 0.005),
# tiled over spatial rows so the VMEM block stays small on every generation.
# ----------------------------------------------------------------------------
def _mask_kernel(x_ref, m_ref):
    xm = jnp.mean(x_ref[0].astype(jnp.float32), axis=0)       # [th, W]
    m_ref[0, 0] = (xm > 0.005).astype(jnp.float32)


def hsi_mask_pallas(hsi_registered: jnp.ndarray) -> jnp.ndarray:
    """hsi_registered: [B, C, T, H, W] -> mask [B, 1, H, W] (float32, 0/1)."""
    b, c, t, h, w = hsi_registered.shape
    ct = c * t
    x = hsi_registered.reshape(b, ct, h, w)
    th = _pick_row_tile(ct, h, w)
    grid = (b, (h + th - 1) // th)
    return pl.pallas_call(
        _mask_kernel,
        out_shape=jax.ShapeDtypeStruct((b, 1, h, w), jnp.float32),
        grid=grid,
        in_specs=[pl.BlockSpec((1, ct, th, w), lambda i, j: (i, 0, j, 0))],
        out_specs=pl.BlockSpec((1, 1, th, w), lambda i, j: (i, 0, j, 0)),
        compiler_params=pltpu.CompilerParams(
            dimension_semantics=("parallel", "parallel"),
            vmem_limit_bytes=48 * 1024 * 1024,
        ),
    )(x)


# ----------------------------------------------------------------------------
# Glue: band-index selection (pure Python, mirrors select_spectral_bands).
# ----------------------------------------------------------------------------
def _select_band_indices(total_bands: int, target_bands: int):
    if total_bands == target_bands:
        return list(range(total_bands))
    if total_bands <= target_bands:
        idx = list(range(total_bands))
    else:
        step = max(1, (total_bands - 1) // (target_bands - 1))
        idx = list(range(0, total_bands, step))[:target_bands]
    if len(idx) > target_bands:
        idx = idx[:target_bands]
    elif len(idx) < target_bands:
        idx = idx + [idx[-1]] * (target_bands - len(idx))
    return idx


# ----------------------------------------------------------------------------
# Forward pass (matches SpatialRegistration.forward).
# ----------------------------------------------------------------------------
def spatial_registration_forward(hsi_img, aux_data, *, analysis_dim=32, target_bands=4):
    b, c, t, h, w = hsi_img.shape

    if t == target_bands and h == analysis_dim and w == analysis_dim:
        hsi_registered = hsi_img
    else:
        if t != target_bands:
            idx = _select_band_indices(t, target_bands)
            hsi_img = jnp.take(hsi_img, jnp.asarray(idx, jnp.int32), axis=2)
            b, c, t, h, w = hsi_img.shape
        if h == analysis_dim and w == analysis_dim:
            hsi_registered = hsi_img
        else:
            # PyTorch does a flat .view(B*T, C, H, W) then resizes; interpolation
            # is independent per leading index so a flat [B*C*T, H, W] reshape is
            # semantically identical (and inverted by the trailing reshape).
            flat = hsi_img.reshape(b * c * t, h, w)
            resized = bilinear_resize_pallas(flat, analysis_dim, analysis_dim)
            hsi_registered = resized.reshape(b, c, t, analysis_dim, analysis_dim)

    aux_registered = {}
    for modality, data in aux_data.items():
        if data is None:
            aux_registered[modality] = None
            continue
        ab, ac, ah, aw = data.shape
        if ah == analysis_dim and aw == analysis_dim:
            aux_registered[modality] = data
        else:
            flat = data.reshape(ab * ac, ah, aw)
            resized = bilinear_resize_pallas(flat, analysis_dim, analysis_dim)
            aux_registered[modality] = resized.reshape(ab, ac, analysis_dim, analysis_dim)

    thickness_mask = hsi_mask_pallas(hsi_registered)
    return hsi_registered, aux_registered, thickness_mask


# ----------------------------------------------------------------------------
# Demo / smoke test.
# ----------------------------------------------------------------------------
if __name__ == "__main__":
    ANALYSIS_DIM = 32   # small stand-in for 500
    TARGET_BANDS = 4    # small stand-in for 30

    key = jax.random.PRNGKey(0)
    k1, k2 = jax.random.split(key)

    # HSI: [B, C, T, H, W] = [2, 1, 8, 16, 16]  -> bands 8 -> 4, spatial 16 -> 32
    hsi = jax.random.uniform(k1, (2, 1, 8, 16, 16), dtype=jnp.float32)
    # Aux modality: [B, C, H, W] = [2, 3, 24, 24] -> spatial 24 -> 32
    aux = {
        "thickness": jax.random.uniform(k2, (2, 3, 24, 24), dtype=jnp.float32),
        "missing": None,
    }

    hsi_reg, aux_reg, mask = spatial_registration_forward(
        hsi, aux, analysis_dim=ANALYSIS_DIM, target_bands=TARGET_BANDS
    )

    jax.block_until_ready(hsi_reg)
    jax.block_until_ready(mask)
    for v in aux_reg.values():
        if v is not None:
            jax.block_until_ready(v)

    # ---- shape / dtype checks --------------------------------------------
    assert hsi_reg.shape == (2, 1, TARGET_BANDS, ANALYSIS_DIM, ANALYSIS_DIM)
    assert aux_reg["thickness"].shape == (2, 3, ANALYSIS_DIM, ANALYSIS_DIM)
    assert aux_reg["missing"] is None
    assert mask.shape == (2, 1, ANALYSIS_DIM, ANALYSIS_DIM)
    assert mask.dtype == jnp.float32
    # sanity: bilinear weight rows sum to 1 -> resized values stay in [0, 1]
    assert float(jnp.max(hsi_reg)) <= 1.0 + 1e-5 and float(jnp.min(hsi_reg)) >= -1e-5

    # ---- numerical reference check (host numpy) --------------------------
    idx = _select_band_indices(8, TARGET_BANDS)
    hsi_np = np.asarray(hsi)[:, :, idx]                       # [2,1,4,16,16]
    flat = hsi_np.reshape(-1, 16, 16)
    wh16 = _interp_matrix_np(16, ANALYSIS_DIM)
    ref_hsi = np.einsum('oh,nhw,wq->noq', wh16, flat, wh16.T)
    assert np.allclose(np.asarray(hsi_reg).reshape(-1, ANALYSIS_DIM, ANALYSIS_DIM),
                       ref_hsi, atol=1e-4)

    aux_np = np.asarray(aux["thickness"]).reshape(-1, 24, 24)
    wh24 = _interp_matrix_np(24, ANALYSIS_DIM)
    ref_aux = np.einsum('oh,nhw,wq->noq', wh24, aux_np, wh24.T)
    assert np.allclose(np.asarray(aux_reg["thickness"]).reshape(-1, ANALYSIS_DIM, ANALYSIS_DIM),
                       ref_aux, atol=1e-4)

    ref_mask = (np.asarray(hsi_reg).reshape(2, TARGET_BANDS, ANALYSIS_DIM, ANALYSIS_DIM)
                .mean(axis=1) > 0.005).astype(np.float32)[:, None]
    assert np.array_equal(np.asarray(mask), ref_mask)

    print("KERNEL_OK")
</pallas_src>

<mosaic_0001>
module attributes {stable_mosaic.version = 11 : i64} {
  func.func @_resize_kernel(%arg0: i32, %arg1: memref<32x16xf32, #tpu.memory_space<vmem>>, %arg2: memref<16x32xf32, #tpu.memory_space<vmem>>, %arg3: memref<128x16xf32, #tpu.memory_space<vmem>>, %arg4: memref<256x32xf32, #tpu.memory_space<vmem>>, %arg5: memref<256x16xf32, #tpu.memory_space<vmem>>) attributes {dimension_semantics = [#tpu.dimension_semantics<parallel>], iteration_bounds = array<i64: 1>, scalar_prefetch = 0 : i64, scratch_operands = 1 : i64, tpu.core_type = #tpu.core_type<tc>, window_params = [{pipeline_mode = #tpu.pipeline_mode<synchronous>, transform_indices = @transform_0, window_bounds = array<i64: 32, 16>}, {pipeline_mode = #tpu.pipeline_mode<synchronous>, transform_indices = @transform_1, window_bounds = array<i64: 16, 32>}, {transform_indices = @transform_2, window_bounds = array<i64: 128, 16>}, {transform_indices = @transform_3, window_bounds = array<i64: 256, 32>}]} {
    %c0 = arith.constant 0 : index
    %c0_0 = arith.constant 0 : index
    %0 = vector.load %arg1[%c0, %c0_0] : memref<32x16xf32, #tpu.memory_space<vmem>>, vector<32x16xf32>
    %c0_1 = arith.constant 0 : index
    %c0_2 = arith.constant 0 : index
    %1 = vector.load %arg3[%c0_1, %c0_2] : memref<128x16xf32, #tpu.memory_space<vmem>>, vector<16x16xf32>
    %cst = arith.constant dense<0.000000e+00> : vector<32x16xf32>
    %2 = tpu.matmul %0, %1, %cst {dimension_numbers = #tpu.dot_dimension_numbers<[1], [0], [0], [1], [0, 0, 1, 1], [], []>} : vector<32x16xf32>, vector<16x16xf32>, vector<32x16xf32> -> vector<32x16xf32>
    %c0_3 = arith.constant 0 : index
    %c0_4 = arith.constant 0 : index
    %3 = vector.load %arg5[%c0_3, %c0_4] : memref<256x16xf32, #tpu.memory_space<vmem>>, vector<32x16xf32>
    tpu.vector_store %arg5[%c0_3, %c0_4], %2 {strides = array<i32>} : memref<256x16xf32, #tpu.memory_space<vmem>>, vector<32x16xf32>,
    %c16 = arith.constant 16 : index
    %c0_5 = arith.constant 0 : index
    %4 = vector.load %arg3[%c16, %c0_5] : memref<128x16xf32, #tpu.memory_space<vmem>>, vector<16x16xf32>
    %cst_6 = arith.constant dense<0.000000e+00> : vector<32x16xf32>
    %5 = tpu.matmul %0, %4, %cst_6 {dimension_numbers = #tpu.dot_dimension_numbers<[1], [0], [0], [1], [0, 0, 1, 1], [], []>} : vector<32x16xf32>, vector<16x16xf32>, vector<32x16xf32> -> vector<32x16xf32>
    %c32 = arith.constant 32 : index
    %c0_7 = arith.constant 0 : index
    %6 = vector.load %arg5[%c32, %c0_7] : memref<256x16xf32, #tpu.memory_space<vmem>>, vector<32x16xf32>
    tpu.vector_store %arg5[%c32, %c0_7], %5 {strides = array<i32>} : memref<256x16xf32, #tpu.memory_space<vmem>>, vector<32x16xf32>,
    %c32_8 = arith.constant 32 : index
    %c0_9 = arith.constant 0 : index
    %7 = vector.load %arg3[%c32_8, %c0_9] : memref<128x16xf32, #tpu.memory_space<vmem>>, vector<16x16xf32>
    %cst_10 = arith.constant dense<0.000000e+00> : vector<32x16xf32>
    %8 = tpu.matmul %0, %7, %cst_10 {dimension_numbers = #tpu.dot_dimension_numbers<[1], [0], [0], [1], [0, 0, 1, 1], [], []>} : vector<32x16xf32>, vector<16x16xf32>, vector<32x16xf32> -> vector<32x16xf32>
    %c64 = arith.constant 64 : index
    %c0_11 = arith.constant 0 : index
    %9 = vector.load %arg5[%c64, %c0_11] : memref<256x16xf32, #tpu.memory_space<vmem>>, vector<32x16xf32>
    tpu.vector_store %arg5[%c64, %c0_11], %8 {strides = array<i32>} : memref<256x16xf32, #tpu.memory_space<vmem>>, vector<32x16xf32>,
    %c48 = arith.constant 48 : index
    %c0_12 = arith.constant 0 : index
    %10 = vector.load %arg3[%c48, %c0_12] : memref<128x16xf32, #tpu.memory_space<vmem>>, vector<16x16xf32>
    %cst_13 = arith.constant dense<0.000000e+00> : vector<32x16xf32>
    %11 = tpu.matmul %0, %10, %cst_13 {dimension_numbers = #tpu.dot_dimension_numbers<[1], [0], [0], [1], [0, 0, 1, 1], [], []>} : vector<32x16xf32>, vector<16x16xf32>, vector<32x16xf32> -> vector<32x16xf32>
    %c96 = arith.constant 96 : index
    %c0_14 = arith.constant 0 : index
    %12 = vector.load %arg5[%c96, %c0_14] : memref<256x16xf32, #tpu.memory_space<vmem>>, vector<32x16xf32>
    tpu.vector_store %arg5[%c96, %c0_14], %11 {strides = array<i32>} : memref<256x16xf32, #tpu.memory_space<vmem>>, vector<32x16xf32>,
    %c64_15 = arith.constant 64 : index
    %c0_16 = arith.constant 0 : index
    %13 = vector.load %arg3[%c64_15, %c0_16] : memref<128x16xf32, #tpu.memory_space<vmem>>, vector<16x16xf32>
    %cst_17 = arith.constant dense<0.000000e+00> : vector<32x16xf32>
    %14 = tpu.matmul %0, %13, %cst_17 {dimension_numbers = #tpu.dot_dimension_numbers<[1], [0], [0], [1], [0, 0, 1, 1], [], []>} : vector<32x16xf32>, vector<16x16xf32>, vector<32x16xf32> -> vector<32x16xf32>
    %c128 = arith.constant 128 : index
    %c0_18 = arith.constant 0 : index
    %15 = vector.load %arg5[%c128, %c0_18] : memref<256x16xf32, #tpu.memory_space<vmem>>, vector<32x16xf32>
    tpu.vector_store %arg5[%c128, %c0_18], %14 {strides = array<i32>} : memref<256x16xf32, #tpu.memory_space<vmem>>, vector<32x16xf32>,
    %c80 = arith.constant 80 : index
    %c0_19 = arith.constant 0 : index
    %16 = vector.load %arg3[%c80, %c0_19] : memref<128x16xf32, #tpu.memory_space<vmem>>, vector<16x16xf32>
    %cst_20 = arith.constant dense<0.000000e+00> : vector<32x16xf32>
    %17 = tpu.matmul %0, %16, %cst_20 {dimension_numbers = #tpu.dot_dimension_numbers<[1], [0], [0], [1], [0, 0, 1, 1], [], []>} : vector<32x16xf32>, vector<16x16xf32>, vector<32x16xf32> -> vector<32x16xf32>
    %c160 = arith.constant 160 : index
    %c0_21 = arith.constant 0 : index
    %18 = vector.load %arg5[%c160, %c0_21] : memref<256x16xf32, #tpu.memory_space<vmem>>, vector<32x16xf32>
    tpu.vector_store %arg5[%c160, %c0_21], %17 {strides = array<i32>} : memref<256x16xf32, #tpu.memory_space<vmem>>, vector<32x16xf32>,
    %c96_22 = arith.constant 96 : index
    %c0_23 = arith.constant 0 : index
    %19 = vector.load %arg3[%c96_22, %c0_23] : memref<128x16xf32, #tpu.memory_space<vmem>>, vector<16x16xf32>
    %cst_24 = arith.constant dense<0.000000e+00> : vector<32x16xf32>
    %20 = tpu.matmul %0, %19, %cst_24 {dimension_numbers = #tpu.dot_dimension_numbers<[1], [0], [0], [1], [0, 0, 1, 1], [], []>} : vector<32x16xf32>, vector<16x16xf32>, vector<32x16xf32> -> vector<32x16xf32>
    %c192 = arith.constant 192 : index
    %c0_25 = arith.constant 0 : index
    %21 = vector.load %arg5[%c192, %c0_25] : memref<256x16xf32, #tpu.memory_space<vmem>>, vector<32x16xf32>
    tpu.vector_store %arg5[%c192, %c0_25], %20 {strides = array<i32>} : memref<256x16xf32, #tpu.memory_space<vmem>>, vector<32x16xf32>,
    %c112 = arith.constant 112 : index
    %c0_26 = arith.constant 0 : index
    %22 = vector.load %arg3[%c112, %c0_26] : memref<128x16xf32, #tpu.memory_space<vmem>>, vector<16x16xf32>
    %cst_27 = arith.constant dense<0.000000e+00> : vector<32x16xf32>
    %23 = tpu.matmul %0, %22, %cst_27 {dimension_numbers = #tpu.dot_dimension_numbers<[1], [0], [0], [1], [0, 0, 1, 1], [], []>} : vector<32x16xf32>, vector<16x16xf32>, vector<32x16xf32> -> vector<32x16xf32>
    %c224 = arith.constant 224 : index
    %c0_28 = arith.constant 0 : index
    %24 = vector.load %arg5[%c224, %c0_28] : memref<256x16xf32, #tpu.memory_space<vmem>>, vector<32x16xf32>
    tpu.vector_store %arg5[%c224, %c0_28], %23 {strides = array<i32>} : memref<256x16xf32, #tpu.memory_space<vmem>>, vector<32x16xf32>,
    %c0_29 = arith.constant 0 : index
    %c0_30 = arith.constant 0 : index
    %25 = vector.load %arg5[%c0_29, %c0_30] : memref<256x16xf32, #tpu.memory_space<vmem>>, vector<256x16xf32>
    %c0_31 = arith.constant 0 : index
    %c0_32 = arith.constant 0 : index
    %26 = vector.load %arg2[%c0_31, %c0_32] : memref<16x32xf32, #tpu.memory_space<vmem>>, vector<16x32xf32>
    %cst_33 = arith.constant dense<0.000000e+00> : vector<256x32xf32>
    %27 = tpu.matmul %25, %26, %cst_33 {dimension_numbers = #tpu.dot_dimension_numbers<[1], [0], [0], [1], [0, 0, 1, 1], [], []>} : vector<256x16xf32>, vector<16x32xf32>, vector<256x32xf32> -> vector<256x32xf32>
    %c0_34 = arith.constant 0 : index
    %c0_35 = arith.constant 0 : index
    %28 = vector.load %arg4[%c0_34, %c0_35] : memref<256x32xf32, #tpu.memory_space<vmem>>, vector<256x32xf32>
    tpu.vector_store %arg4[%c0_34, %c0_35], %27 {strides = array<i32>} : memref<256x32xf32, #tpu.memory_space<vmem>>, vector<256x32xf32>,
    return
  }
  func.func @transform_0(%arg0: i32) -> (i32, i32) {
    %c0_i32 = arith.constant 0 : i32
    %c0_i32_0 = arith.constant 0 : i32
    %c0_i32_1 = arith.constant 0 : i32
    return %c0_i32, %c0_i32_0 : i32, i32
  }
  func.func @transform_1(%arg0: i32) -> (i32, i32) {
    %c0_i32 = arith.constant 0 : i32
    %c0_i32_0 = arith.constant 0 : i32
    %c0_i32_1 = arith.constant 0 : i32
    return %c0_i32, %c0_i32_0 : i32, i32
  }
  func.func @transform_2(%arg0: i32) -> (i32, i32) {
    %c0_i32 = arith.constant 0 : i32
    %c0_i32_0 = arith.constant 0 : i32
    return %arg0, %c0_i32 : i32, i32
  }
  func.func @transform_3(%arg0: i32) -> (i32, i32) {
    %c0_i32 = arith.constant 0 : i32
    %c0_i32_0 = arith.constant 0 : i32
    return %arg0, %c0_i32 : i32, i32
  }
}

</mosaic_0001>

<bundles_post_ra>
// kernel: tpu_custom_call.1
= control target key start
LH: loop header
LB: loop body
LE: loop exit
PB: predicated region body
PF: predicated region fallthrough
CT: control target
= control target key end

     0   :  { %vm20_vm0 = vcmask 130048   ;;  %vm1114_vm1 = vcmask 261120   ;;  %s1773_s2 = inlined_call_operand.vmem [shape: f32[128,16], index: 2, kind: input, shape index: {}]   ;;  %s1774_s0 = inlined_call_operand.vmem [shape: f32[32,16], index: 0, kind: input, shape index: {}]   ;;  %s1775_s1 = inlined_call_operand.vmem [shape: f32[16,32], index: 1, kind: input, shape index: {}]   ;;  %s1776_s3 = inlined_call_operand.vmem [shape: f32[256,32], index: 3, kind: output, shape index: {}]  }
   0x1   :  { %v19_v0 = vld [vmem:[%s1773_s2 + $0x8] sm:$0xff]  ;;  %v18_v1 = vld [vmem:[%s1773_s2] sm:$0xff]  ;;  %v123_v5 = vld [vmem:[%s1773_s2 + $0x18] sm:$0xff] }
   0x2   :  { %v1462_v2 = vld [vmem:[%s1774_s0] sm:$0xff]  ;;  %1297 = vmatprep.subr.mxu0 %v19_v0  ;;  %v1469_v3 = vld [vmem:[%s1774_s0 + $0x8] sm:$0xff]  ;;  %v1482_v6 = vld [vmem:[%s1774_s0 + $0x10] sm:$0xff]  ;;  %1307 = vmatprep.subr.mxu1 %v123_v5 }
   0x3   :  { %1301 = vmatprep.mubr.msk.f32.mxu0 %vm20_vm0, %v1462_v2  ;;  %1298 = vmatpush3.msra.mxu0 %v19_v0  ;;  %v214_v4 = vld [vmem:[%s1773_s2 + $0x28] sm:$0xff]  ;;  %v213_v7 = vld [vmem:[%s1773_s2 + $0x20] sm:$0xff]  ;;  %v122_v8 = vld [vmem:[%s1773_s2 + $0x10] sm:$0xff] }
   0x4   :  { %1311 = vmatprep.mubr.msk.f32.mxu1 %vm20_vm0, %v1462_v2  ;;  %1299 = vmatprep.subr.mxu0 %v18_v1  ;;  %v17_v9 = vld [vmem:[%s1774_s0 + $0x18] sm:$0xff]  ;;  %v396_v11 = vld [vmem:[%s1773_s2 + $0x48] sm:$0xff]  ;;  %v304_v12 = vld [vmem:[%s1773_s2 + $0x30] sm:$0xff] }
   0x5   :  { %1300 = vmatpush3.msra.mxu0 %v18_v1  ;;  %1308 = vmatpush3.msra.mxu1 %v123_v5  ;;  %v305_v10 = vld [vmem:[%s1773_s2 + $0x38] sm:$0xff]  ;;  %v395_v13 = vld [vmem:[%s1773_s2 + $0x40] sm:$0xff]  ;;  %v486_v15 = vld [vmem:[%s1773_s2 + $0x50] sm:$0xff] }
   0x6   :  { %1302 = vmatmul.mubr.msk.f32.vlgmr.msra.gmra.mxu0 %vm20_vm0, %v1469_v3  ;;  %1317 = vmatprep.subr.mxu0 %v214_v4  ;;  %v487_v14 = vld [vmem:[%s1773_s2 + $0x58] sm:$0xff]  ;;  %v578_v16 = vld [vmem:[%s1773_s2 + $0x68] sm:$0xff]  ;;  %v577_v17 = vld [vmem:[%s1773_s2 + $0x60] sm:$0xff] }
   0x7   :  { %1318 = vmatpush3.msra.mxu0 %v214_v4  ;;  %1304 = vmatprep.mubr.msk.f32.mxu0 %vm20_vm0, %v1482_v6  ;;  %v669_v18 = vld [vmem:[%s1773_s2 + $0x78] sm:$0xff]  ;;  %v668_v19 = vld [vmem:[%s1773_s2 + $0x70] sm:$0xff]  ;;  %v792_v20 = vld [vmem:[%s1775_s1 + $0x8] sm:$0xff] }
   0x8   :  { %1319 = vmatprep.subr.mxu0 %v213_v7  ;;  %1309 = vmatprep.subr.mxu1 %v122_v8  ;;  %v791_v21 = vld [vmem:[%s1775_s1] sm:$0xff] }
   0x9   :  { %1320 = vmatpush3.msra.mxu0 %v213_v7  ;;  %1310 = vmatpush3.msra.mxu1 %v122_v8 }
   0xa   :  { %1305 = vmatmul.mubr.msk.f32.gmra.mxu0 %vm20_vm0, %v17_v9  ;;  %1312 = vmatmul.mubr.msk.f32.vlgmr.msra.gmra.mxu1 %vm20_vm0, %v1469_v3 }
   0xb   :  { %1321 = vmatprep.mubr.msk.f32.mxu0 %vm20_vm0, %v1462_v2  ;;  %1327 = vmatprep.subr.mxu1 %v305_v10 }
   0xc   :  { %1337 = vmatprep.subr.mxu0 %v396_v11  ;;  %1328 = vmatpush3.msra.mxu1 %v305_v10 }
   0xd   :  { %1314 = vmatprep.mubr.msk.f32.mxu1 %vm20_vm0, %v1482_v6  ;;  %1329 = vmatprep.subr.mxu1 %v304_v12 }
   0xe   :  { %1322 = vmatmul.mubr.msk.f32.vlgmr.msra.gmra.mxu0 %vm20_vm0, %v1469_v3  ;;  %1315 = vmatmul.mubr.msk.f32.gmra.mxu1 %vm20_vm0, %v17_v9 }
   0xf   :  { %1338 = vmatpush3.msra.mxu0 %v396_v11  ;;  %1324 = vmatprep.mubr.msk.f32.mxu0 %vm20_vm0, %v1482_v6 }
  0x10   :  { %1339 = vmatprep.subr.mxu0 %v395_v13  ;;  %1330 = vmatpush3.msra.mxu1 %v304_v12 }
  0x11   :  { %1340 = vmatpush3.msra.mxu0 %v395_v13  ;;  %1331 = vmatprep.mubr.msk.f32.mxu1 %vm20_vm0, %v1462_v2 }
  0x12   :  { %1325 = vmatmul.mubr.msk.f32.gmra.mxu0 %vm20_vm0, %v17_v9  ;;  %1332 = vmatmul.mubr.msk.f32.vlgmr.msra.gmra.mxu1 %vm20_vm0, %v1469_v3 }
  0x13   :  { %1341 = vmatprep.mubr.msk.f32.mxu0 %vm20_vm0, %v1462_v2  ;;  %1347 = vmatprep.subr.mxu1 %v487_v14 }
  0x14   :  { %1348 = vmatpush3.msra.mxu1 %v487_v14  ;;  %1334 = vmatprep.mubr.msk.f32.mxu1 %vm20_vm0, %v1482_v6 }
  0x15   :  { %1349 = vmatprep.subr.mxu1 %v486_v15  ;;  %1357 = vmatprep.subr.mxu0 %v578_v16 }
  0x16   :  { %1342 = vmatmul.mubr.msk.f32.vlgmr.msra.gmra.mxu0 %vm20_vm0, %v1469_v3  ;;  %1335 = vmatmul.mubr.msk.f32.gmra.mxu1 %vm20_vm0, %v17_v9 }
  0x17   :  { %1344 = vmatprep.mubr.msk.f32.mxu0 %vm20_vm0, %v1482_v6  ;;  %1350 = vmatpush3.msra.mxu1 %v486_v15 }
  0x18   :  { %1351 = vmatprep.mubr.msk.f32.mxu1 %vm20_vm0, %v1462_v2  ;;  %1358 = vmatpush3.msra.mxu0 %v578_v16 }
  0x19   :  { %1359 = vmatprep.subr.mxu0 %v577_v17  ;;  %1367 = vmatprep.subr.mxu1 %v669_v18 }
  0x1a   :  { %1345 = vmatmul.mubr.msk.f32.gmra.mxu0 %vm20_vm0, %v17_v9  ;;  %1352 = vmatmul.mubr.msk.f32.vlgmr.msra.gmra.mxu1 %vm20_vm0, %v1469_v3 }
  0x1b   :  { %1354 = vmatprep.mubr.msk.f32.mxu1 %vm20_vm0, %v1482_v6  ;;  %1360 = vmatpush3.msra.mxu0 %v577_v17 }
  0x1c   :  { %1361 = vmatprep.mubr.msk.f32.mxu0 %vm20_vm0, %v1462_v2  ;;  %1368 = vmatpush3.msra.mxu1 %v669_v18 }
  0x1d   :  { %1369 = vmatprep.subr.mxu1 %v668_v19  ;;  %1377 = vmatprep.subr.mxu0 %v792_v20 }
  0x1e   :  { %1355 = vmatmul.mubr.msk.f32.gmra.mxu1 %vm20_vm0, %v17_v9  ;;  %1362 = vmatmul.mubr.msk.f32.vlgmr.msra.gmra.mxu0 %vm20_vm0, %v1469_v3 }
  0x1f   :  { %1364 = vmatprep.mubr.msk.f32.mxu0 %vm20_vm0, %v1482_v6  ;;  %1370 = vmatpush3.msra.mxu1 %v668_v19 }
  0x20   :  { %1371 = vmatprep.mubr.msk.f32.mxu1 %vm20_vm0, %v1462_v2  ;;  %1429 = vmatprep.subr.mxu1 %v792_v20 }
  0x21   :  { %1378 = vmatpush3.msra.mxu0 %v792_v20 }
  0x22   :  { %1365 = vmatmul.mubr.msk.f32.gmra.mxu0 %vm20_vm0, %v17_v9  ;;  %1372 = vmatmul.mubr.msk.f32.vlgmr.msra.gmra.mxu1 %vm20_vm0, %v1469_v3 }
  0x23   :  { %1374 = vmatprep.mubr.msk.f32.mxu1 %vm20_vm0, %v1482_v6  ;;  %1431 = vmatpush3.msra.mxu1 %v792_v20 }
  0x24   :  { %1379 = vmatprep.subr.mxu0 %v791_v21  ;;  %1430 = vmatprep.subr.mxu1 %v791_v21 }
  0x25   :  { %1380 = vmatpush3.msra.mxu0 %v791_v21  ;;  %1432 = vmatpush3.msra.mxu1 %v791_v21 }
  0x26   :  { %1375 = vmatmul.mubr.msk.f32.gmra.mxu1 %vm20_vm0, %v17_v9 }
  0xc6   :  { %v1303_v22 = vpop.f32.mrf.mxu0 }
  0xc7   :  { %119 = vst.msk [vmem:[#allocation2 + $0x8] sm:$0xff] %vm20_vm0, %v1303_v22 }
  0xc8   :  { %v99_v23 = vpop.f32.mrf.mxu0 }
  0xc9   :  { %118 = vst.msk [vmem:[#allocation2] sm:$0xff] %vm20_vm0, %v99_v23 }
  0xca   :  { %v1306_v24 = vpop.f32.mrf.mxu0  ;;  %v1313_v25 = vpop.f32.mrf.mxu1 }
  0xcb   :  { %121 = vst.msk [vmem:[#allocation2 + $0x18] sm:$0xff] %vm20_vm0, %v1306_v24  ;;  %210 = vst.msk [vmem:[#allocation2 + $0x28] sm:$0xff] %vm20_vm0, %v1313_v25 }
  0xcc   :  { %v109_v26 = vpop.f32.mrf.mxu0  ;;  %v190_v27 = vpop.f32.mrf.mxu1 }
  0xcd   :  { %120 = vst.msk [vmem:[#allocation2 + $0x10] sm:$0xff] %vm20_vm0, %v109_v26  ;;  %209 = vst.msk [vmem:[#allocation2 + $0x20] sm:$0xff] %vm20_vm0, %v190_v27 }
  0xce   :  { %v1323_v28 = vpop.f32.mrf.mxu0  ;;  %v1316_v29 = vpop.f32.mrf.mxu1  ;;  %v760_v33 = vld [vmem:[#allocation2 + $0x8] sm:$0xff] }
  0xcf   :  { %301 = vst.msk [vmem:[#allocation2 + $0x48] sm:$0xff] %vm20_vm0, %v1323_v28  ;;  %212 = vst.msk [vmem:[#allocation2 + $0x38] sm:$0xff] %vm20_vm0, %v1316_v29 }
  0xd0   :  { %v281_v30 = vpop.f32.mrf.mxu0  ;;  %v759_v31 = vld [vmem:[#allocation2] sm:$0xff]  ;;  %v200_v32 = vpop.f32.mrf.mxu1 }
  0xd1   :  { %300 = vst.msk [vmem:[#allocation2 + $0x40] sm:$0xff] %vm20_vm0, %v281_v30  ;;  %1381 = vmatprep.mubr.msk.f32.mxu0 %vm20_vm0, %v759_v31  ;;  %211 = vst.msk [vmem:[#allocation2 + $0x30] sm:$0xff] %vm20_vm0, %v200_v32 }
  0xd2   :  { %v1326_v34 = vpop.f32.mrf.mxu0  ;;  %1382 = vmatmul.mubr.msk.f32.vlgmr.msra.gmra.mxu0 %vm20_vm0, %v760_v33  ;;  %v1333_v35 = vpop.f32.mrf.mxu1  ;;  %v762_v40 = vld [vmem:[#allocation2 + $0x18] sm:$0xff]  ;;  %v764_v46 = vld [vmem:[#allocation2 + $0x28] sm:$0xff] }
  0xd3   :  { %303 = vst.msk [vmem:[#allocation2 + $0x58] sm:$0xff] %vm20_vm0, %v1326_v34  ;;  %392 = vst.msk [vmem:[#allocation2 + $0x68] sm:$0xff] %vm20_vm0, %v1333_v35 }
  0xd4   :  { %v291_v36 = vpop.f32.mrf.mxu0  ;;  %v761_v37 = vld [vmem:[#allocation2 + $0x10] sm:$0xff]  ;;  %v372_v38 = vpop.f32.mrf.mxu1  ;;  %v763_v39 = vld [vmem:[#allocation2 + $0x20] sm:$0xff] }
  0xd5   :  { %302 = vst.msk [vmem:[#allocation2 + $0x50] sm:$0xff] %vm20_vm0, %v291_v36  ;;  %1384 = vmatprep.mubr.msk.f32.mxu0 %vm20_vm0, %v761_v37  ;;  %391 = vst.msk [vmem:[#allocation2 + $0x60] sm:$0xff] %vm20_vm0, %v372_v38 }
  0xd6   :  { %v1343_v41 = vpop.f32.mrf.mxu0  ;;  %1385 = vmatmul.mubr.msk.f32.gmra.mxu0 %vm20_vm0, %v762_v40  ;;  %v1336_v42 = vpop.f32.mrf.mxu1  ;;  %v766_v51 = vld [vmem:[#allocation2 + $0x38] sm:$0xff]  ;;  %v768_v58 = vld [vmem:[#allocation2 + $0x48] sm:$0xff] }
  0xd7   :  { %483 = vst.msk [vmem:[#allocation2 + $0x88] sm:$0xff] %vm20_vm0, %v1343_v41  ;;  %1387 = vmatprep.mubr.msk.f32.mxu0 %vm20_vm0, %v763_v39  ;;  %394 = vst.msk [vmem:[#allocation2 + $0x78] sm:$0xff] %vm20_vm0, %v1336_v42 }
  0xd8   :  { %v463_v43 = vpop.f32.mrf.mxu0  ;;  %v382_v44 = vpop.f32.mrf.mxu1  ;;  %v765_v45 = vld [vmem:[#allocation2 + $0x30] sm:$0xff]  ;;  %v767_v52 = vld [vmem:[#allocation2 + $0x40] sm:$0xff] }
  0xd9   :  { %482 = vst.msk [vmem:[#allocation2 + $0x80] sm:$0xff] %vm20_vm0, %v463_v43  ;;  %393 = vst.msk [vmem:[#allocation2 + $0x70] sm:$0xff] %vm20_vm0, %v382_v44 }
  0xda   :  { %v1346_v47 = vpop.f32.mrf.mxu0  ;;  %1388 = vmatmul.mubr.msk.f32.gmra.mxu0 %vm20_vm0, %v764_v46  ;;  %v1353_v48 = vpop.f32.mrf.mxu1  ;;  %v770_v3 = vld [vmem:[#allocation2 + $0x58] sm:$0xff]  ;;  %v772_v9 = vld [vmem:[#allocation2 + $0x68] sm:$0xff] }
  0xdb   :  { %485 = vst.msk [vmem:[#allocation2 + $0x98] sm:$0xff] %vm20_vm0, %v1346_v47  ;;  %1390 = vmatprep.mubr.msk.f32.mxu0 %vm20_vm0, %v765_v45  ;;  %574 = vst.msk [vmem:[#allocation2 + $0xa8] sm:$0xff] %vm20_vm0, %v1353_v48 }
  0xdc   :  { %v473_v49 = vpop.f32.mrf.mxu0  ;;  %v554_v50 = vpop.f32.mrf.mxu1  ;;  %v769_v60 = vld [vmem:[#allocation2 + $0x50] sm:$0xff]  ;;  %v771_v5 = vld [vmem:[#allocation2 + $0x60] sm:$0xff] }
  0xdd   :  { %484 = vst.msk [vmem:[#allocation2 + $0x90] sm:$0xff] %vm20_vm0, %v473_v49  ;;  %573 = vst.msk [vmem:[#allocation2 + $0xa0] sm:$0xff] %vm20_vm0, %v554_v50 }
  0xde   :  { %1391 = vmatmul.mubr.msk.f32.gmra.mxu0 %vm20_vm0, %v766_v51  ;;  %v1356_v53 = vpop.f32.mrf.mxu1  ;;  %v1363_v54 = vpop.f32.mrf.mxu0  ;;  %v776_v59 = vld [vmem:[#allocation2 + $0x88] sm:$0xff]  ;;  %v774_v13 = vld [vmem:[#allocation2 + $0x78] sm:$0xff] }
  0xdf   :  { %1393 = vmatprep.mubr.msk.f32.mxu0 %vm20_vm0, %v767_v52  ;;  %576 = vst.msk [vmem:[#allocation2 + $0xb8] sm:$0xff] %vm20_vm0, %v1356_v53  ;;  %665 = vst.msk [vmem:[#allocation2 + $0xc8] sm:$0xff] %vm20_vm0, %v1363_v54 }
  0xe0   :  { %v775_v55 = vld [vmem:[#allocation2 + $0x80] sm:$0xff]  ;;  %v564_v56 = vpop.f32.mrf.mxu1  ;;  %v645_v57 = vpop.f32.mrf.mxu0  ;;  %v773_v11 = vld [vmem:[#allocation2 + $0x70] sm:$0xff] }
  0xe1   :  { %1405 = vmatprep.mubr.msk.f32.mxu1 %vm20_vm0, %v775_v55  ;;  %575 = vst.msk [vmem:[#allocation2 + $0xb0] sm:$0xff] %vm20_vm0, %v564_v56  ;;  %664 = vst.msk [vmem:[#allocation2 + $0xc0] sm:$0xff] %vm20_vm0, %v645_v57 }
  0xe2   :  { %1394 = vmatmul.mubr.msk.f32.gmra.mxu0 %vm20_vm0, %v768_v58  ;;  %1406 = vmatmul.mubr.msk.f32.vlgmr.msra.gmra.mxu1 %vm20_vm0, %v776_v59  ;;  %v1366_v61 = vpop.f32.mrf.mxu0  ;;  %v1373_v62 = vpop.f32.mrf.mxu1  ;;  %v778_v4 = vld [vmem:[#allocation2 + $0x98] sm:$0xff]  ;;  %v780_v10 = vld [vmem:[#allocation2 + $0xa8] sm:$0xff] }
  0xe3   :  { %1396 = vmatprep.mubr.msk.f32.mxu0 %vm20_vm0, %v769_v60  ;;  %667 = vst.msk [vmem:[#allocation2 + $0xd8] sm:$0xff] %vm20_vm0, %v1366_v61  ;;  %756 = vst.msk [vmem:[#allocation2 + $0xe8] sm:$0xff] %vm20_vm0, %v1373_v62 }
  0xe4   :  { %v777_v63 = vld [vmem:[#allocation2 + $0x90] sm:$0xff]  ;;  %v779_v0 = vld [vmem:[#allocation2 + $0xa0] sm:$0xff]  ;;  %v655_v1 = vpop.f32.mrf.mxu0  ;;  %v736_v2 = vpop.f32.mrf.mxu1 }
  0xe5   :  { %1408 = vmatprep.mubr.msk.f32.mxu1 %vm20_vm0, %v777_v63  ;;  %666 = vst.msk [vmem:[#allocation2 + $0xd0] sm:$0xff] %vm20_vm0, %v655_v1  ;;  %755 = vst.msk [vmem:[#allocation2 + $0xe0] sm:$0xff] %vm20_vm0, %v736_v2 }
  0xe6   :  { %1397 = vmatmul.mubr.msk.f32.gmra.mxu0 %vm20_vm0, %v770_v3  ;;  %1409 = vmatmul.mubr.msk.f32.gmra.mxu1 %vm20_vm0, %v778_v4  ;;  %v1376_v6 = vpop.f32.mrf.mxu1  ;;  %v782_v14 = vld [vmem:[#allocation2 + $0xb8] sm:$0xff]  ;;  %v784_v16 = vld [vmem:[#allocation2 + $0xc8] sm:$0xff] }
  0xe7   :  { %1399 = vmatprep.mubr.msk.f32.mxu0 %vm20_vm0, %v771_v5  ;;  %1411 = vmatprep.mubr.msk.f32.mxu1 %vm20_vm0, %v779_v0  ;;  %758 = vst.msk [vmem:[#allocation2 + $0xf8] sm:$0xff] %vm20_vm0, %v1376_v6 }
  0xe8   :  { %v781_v7 = vld [vmem:[#allocation2 + $0xb0] sm:$0xff]  ;;  %v746_v8 = vpop.f32.mrf.mxu1  ;;  %v783_v12 = vld [vmem:[#allocation2 + $0xc0] sm:$0xff] }
  0xe9   :  { %757 = vst.msk [vmem:[#allocation2 + $0xf0] sm:$0xff] %vm20_vm0, %v746_v8 }
  0xea   :  { %1400 = vmatmul.mubr.msk.f32.gmra.mxu0 %vm20_vm0, %v772_v9  ;;  %1412 = vmatmul.mubr.msk.f32.gmra.mxu1 %vm20_vm0, %v780_v10  ;;  %v786_v18 = vld [vmem:[#allocation2 + $0xd8] sm:$0xff]  ;;  %v788_v20 = vld [vmem:[#allocation2 + $0xe8] sm:$0xff] }
  0xeb   :  { %1402 = vmatprep.mubr.msk.f32.mxu0 %vm20_vm0, %v773_v11  ;;  %1414 = vmatprep.mubr.msk.f32.mxu1 %vm20_vm0, %v781_v7 }
  0xec   :  { %v785_v15 = vld [vmem:[#allocation2 + $0xd0] sm:$0xff]  ;;  %v787_v17 = vld [vmem:[#allocation2 + $0xe0] sm:$0xff] }
  0xee   :  { %1403 = vmatmul.mubr.msk.f32.gmra.mxu0 %vm20_vm0, %v774_v13  ;;  %1415 = vmatmul.mubr.msk.f32.gmra.mxu1 %vm20_vm0, %v782_v14  ;;  %v790_v21 = vld [vmem:[#allocation2 + $0xf8] sm:$0xff] }
  0xef   :  { %1417 = vmatprep.mubr.msk.f32.mxu1 %vm20_vm0, %v783_v12 }
  0xf0   :  { %v789_v19 = vld [vmem:[#allocation2 + $0xf0] sm:$0xff] }
  0xf2   :  { %1418 = vmatmul.mubr.msk.f32.gmra.mxu1 %vm20_vm0, %v784_v16 }
  0xf3   :  { %1420 = vmatprep.mubr.msk.f32.mxu1 %vm20_vm0, %v785_v15 }
  0xf6   :  { %1421 = vmatmul.mubr.msk.f32.gmra.mxu1 %vm20_vm0, %v786_v18 }
  0xf7   :  { %1423 = vmatprep.mubr.msk.f32.mxu1 %vm20_vm0, %v787_v17 }
  0xfa   :  { %1424 = vmatmul.mubr.msk.f32.gmra.mxu1 %vm20_vm0, %v788_v20 }
  0xfb   :  { %1426 = vmatprep.mubr.msk.f32.mxu1 %vm20_vm0, %v789_v19 }
  0xfe   :  { %1427 = vmatmul.mubr.msk.f32.gmra.mxu1 %vm20_vm0, %v790_v21 }
 0x192   :  { %v1383_v22 = vpop.f32.mrf.mxu0 }
 0x193   :  { %1116 = vst.msk [vmem:[%s1776_s3 + $0x8] sm:$0xff] %vm1114_vm1, %v1383_v22 }
 0x194   :  { %v955_v23 = vpop.f32.mrf.mxu0 }
 0x195   :  { %1115 = vst.msk [vmem:[%s1776_s3] sm:$0xff] %vm1114_vm1, %v955_v23 }
 0x196   :  { %v1386_v24 = vpop.f32.mrf.mxu0 }
 0x197   :  { %1118 = vst.msk [vmem:[%s1776_s3 + $0x18] sm:$0xff] %vm1114_vm1, %v1386_v24 }
 0x198   :  { %v965_v25 = vpop.f32.mrf.mxu0 }
 0x199   :  { %1117 = vst.msk [vmem:[%s1776_s3 + $0x10] sm:$0xff] %vm1114_vm1, %v965_v25 }
 0x19a   :  { %v1389_v26 = vpop.f32.mrf.mxu0 }
 0x19b   :  { %1120 = vst.msk [vmem:[%s1776_s3 + $0x28] sm:$0xff] %vm1114_vm1, %v1389_v26 }
 0x19c   :  { %v975_v27 = vpop.f32.mrf.mxu0 }
 0x19d   :  { %1119 = vst.msk [vmem:[%s1776_s3 + $0x20] sm:$0xff] %vm1114_vm1, %v975_v27 }
 0x19e   :  { %v1392_v28 = vpop.f32.mrf.mxu0 }
 0x19f   :  { %1122 = vst.msk [vmem:[%s1776_s3 + $0x38] sm:$0xff] %vm1114_vm1, %v1392_v28 }
 0x1a0   :  { %v985_v29 = vpop.f32.mrf.mxu0 }
 0x1a1   :  { %1121 = vst.msk [vmem:[%s1776_s3 + $0x30] sm:$0xff] %vm1114_vm1, %v985_v29 }
 0x1a2   :  { %v1395_v30 = vpop.f32.mrf.mxu0  ;;  %v1407_v31 = vpop.f32.mrf.mxu1 }
 0x1a3   :  { %1124 = vst.msk [vmem:[%s1776_s3 + $0x48] sm:$0xff] %vm1114_vm1, %v1395_v30  ;;  %1132 = vst.msk [vmem:[%s1776_s3 + $0x88] sm:$0xff] %vm1114_vm1, %v1407_v31 }
 0x1a4   :  { %v995_v32 = vpop.f32.mrf.mxu0  ;;  %v1035_v33 = vpop.f32.mrf.mxu1 }
 0x1a5   :  { %1123 = vst.msk [vmem:[%s1776_s3 + $0x40] sm:$0xff] %vm1114_vm1, %v995_v32  ;;  %1131 = vst.msk [vmem:[%s1776_s3 + $0x80] sm:$0xff] %vm1114_vm1, %v1035_v33 }
 0x1a6   :  { %v1398_v34 = vpop.f32.mrf.mxu0  ;;  %v1410_v35 = vpop.f32.mrf.mxu1 }
 0x1a7   :  { %1126 = vst.msk [vmem:[%s1776_s3 + $0x58] sm:$0xff] %vm1114_vm1, %v1398_v34  ;;  %1134 = vst.msk [vmem:[%s1776_s3 + $0x98] sm:$0xff] %vm1114_vm1, %v1410_v35 }
 0x1a8   :  { %v1005_v36 = vpop.f32.mrf.mxu0  ;;  %v1045_v37 = vpop.f32.mrf.mxu1 }
 0x1a9   :  { %1125 = vst.msk [vmem:[%s1776_s3 + $0x50] sm:$0xff] %vm1114_vm1, %v1005_v36  ;;  %1133 = vst.msk [vmem:[%s1776_s3 + $0x90] sm:$0xff] %vm1114_vm1, %v1045_v37 }
 0x1aa   :  { %v1401_v38 = vpop.f32.mrf.mxu0  ;;  %v1413_v39 = vpop.f32.mrf.mxu1 }
 0x1ab   :  { %1128 = vst.msk [vmem:[%s1776_s3 + $0x68] sm:$0xff] %vm1114_vm1, %v1401_v38  ;;  %1136 = vst.msk [vmem:[%s1776_s3 + $0xa8] sm:$0xff] %vm1114_vm1, %v1413_v39 }
 0x1ac   :  { %v1015_v40 = vpop.f32.mrf.mxu0  ;;  %v1055_v41 = vpop.f32.mrf.mxu1 }
 0x1ad   :  { %1127 = vst.msk [vmem:[%s1776_s3 + $0x60] sm:$0xff] %vm1114_vm1, %v1015_v40  ;;  %1135 = vst.msk [vmem:[%s1776_s3 + $0xa0] sm:$0xff] %vm1114_vm1, %v1055_v41 }
 0x1ae   :  { %v1404_v42 = vpop.f32.mrf.mxu0  ;;  %v1416_v43 = vpop.f32.mrf.mxu1 }
 0x1af   :  { %1130 = vst.msk [vmem:[%s1776_s3 + $0x78] sm:$0xff] %vm1114_vm1, %v1404_v42  ;;  %1138 = vst.msk [vmem:[%s1776_s3 + $0xb8] sm:$0xff] %vm1114_vm1, %v1416_v43 }
 0x1b0   :  { %v1025_v44 = vpop.f32.mrf.mxu0  ;;  %v1065_v45 = vpop.f32.mrf.mxu1 }
 0x1b1   :  { %1129 = vst.msk [vmem:[%s1776_s3 + $0x70] sm:$0xff] %vm1114_vm1, %v1025_v44  ;;  %1137 = vst.msk [vmem:[%s1776_s3 + $0xb0] sm:$0xff] %vm1114_vm1, %v1065_v45 }
 0x1b2   :  { %v1419_v46 = vpop.f32.mrf.mxu1 }
 0x1b3   :  { %1140 = vst.msk [vmem:[%s1776_s3 + $0xc8] sm:$0xff] %vm1114_vm1, %v1419_v46 }
 0x1b4   :  { %v1075_v47 = vpop.f32.mrf.mxu1 }
 0x1b5   :  { %1139 = vst.msk [vmem:[%s1776_s3 + $0xc0] sm:$0xff] %vm1114_vm1, %v1075_v47 }
 0x1b6   :  { %v1422_v48 = vpop.f32.mrf.mxu1 }
 0x1b7   :  { %1142 = vst.msk [vmem:[%s1776_s3 + $0xd8] sm:$0xff] %vm1114_vm1, %v1422_v48 }
 0x1b8   :  { %v1085_v49 = vpop.f32.mrf.mxu1 }
 0x1b9   :  { %1141 = vst.msk [vmem:[%s1776_s3 + $0xd0] sm:$0xff] %vm1114_vm1, %v1085_v49 }
 0x1ba   :  { %v1425_v50 = vpop.f32.mrf.mxu1 }
 0x1bb   :  { %1144 = vst.msk [vmem:[%s1776_s3 + $0xe8] sm:$0xff] %vm1114_vm1, %v1425_v50 }
 0x1bc   :  { %v1095_v51 = vpop.f32.mrf.mxu1 }
 0x1bd   :  { %1143 = vst.msk [vmem:[%s1776_s3 + $0xe0] sm:$0xff] %vm1114_vm1, %v1095_v51 }
 0x1be   :  { %v1428_v52 = vpop.f32.mrf.mxu1 }
 0x1bf   :  { %1146 = vst.msk [vmem:[%s1776_s3 + $0xf8] sm:$0xff] %vm1114_vm1, %v1428_v52 }
 0x1c0   :  { %v1105_v53 = vpop.f32.mrf.mxu1 }
 0x1c1   :  { %1145 = vst.msk [vmem:[%s1776_s3 + $0xf0] sm:$0xff] %vm1114_vm1, %v1105_v53 }

</bundles_post_ra>
